<compile_context>
chip_gen: v7x
topology: tpu7x:2x2x1
jax: 0.10.0
libtpu: 0.0.40
codegen_flags: <defaults>
</compile_context>

<pallas_src>
import jax
import jax.numpy as jnp
from jax.experimental import pallas as pl
from jax.experimental.pallas import tpu as pltpu

NEG_SLOPE = 0.01   # nn.LeakyReLU default
LN_EPS = 1e-5      # nn.LayerNorm default


def skip_connection_kernel(x_ref, wt_ref, p_ref, o_ref):
    x_in = x_ref[...]                             # (tm, D) transport dtype
    wt = wt_ref[...]                              # (D, D) = W^T, resident

    # Linear on the MXU with f32 accumulation: y = x @ W^T
    y = jnp.dot(x_in, wt, preferred_element_type=jnp.float32)

    b = p_ref[0:1, :]                             # (1, D) f32
    gamma = p_ref[1:2, :]                         # (1, D) f32
    beta = p_ref[2:3, :]                          # (1, D) f32

    y = y + b
    # LeakyReLU (negative_slope = 0.01)
    y = jnp.where(y > 0, y, NEG_SLOPE * y)

    # Residual add in f32 (bf16 path: residual uses the bf16-rounded x).
    h = x_in.astype(jnp.float32) + y

    # LayerNorm over last dim (two-pass mean/var kept for numerical stability;
    # one-pass E[h^2]-mu^2 only pays off if the XLU reduce is the binding slot).
    mu = jnp.mean(h, axis=-1, keepdims=True)
    d = h - mu
    var = jnp.mean(d * d, axis=-1, keepdims=True)
    out = d * jax.lax.rsqrt(var + LN_EPS) * gamma + beta

    o_ref[...] = out.astype(o_ref.dtype)


def _round_up(v, m):
    return (v + m - 1) // m * m


def skip_connection(x, w, b, gamma, beta, *, tm=1024, io_dtype=jnp.bfloat16):
    """SkipConnection forward: LayerNorm(x + LeakyReLU(x @ W^T + b)).

    x: (batch, seq, dim_model).  w: (D, D) PyTorch nn.Linear weight (out, in).
    b / gamma / beta: (D,).

    io_dtype is the transport dtype for x / W^T / out (default bf16: halves the
    dominant HBM traffic and the resident-weight VMEM; MXU accumulates in f32
    and all LayerNorm math is f32).  Pass io_dtype=jnp.float32 (or None to keep
    x.dtype) for bit-faithful f32 semantics.  If the caller already holds bf16
    activations the wrapper cast is a no-op (no extra HBM pass).

    For real workloads prefer dim_model a multiple of 128 (256 on v6e/v7x):
    sub-128 D forces masked stores and idles most MXU columns.
    """
    B, S, D = x.shape
    N = B * S

    if io_dtype is None:
        io_dtype = x.dtype
    x2 = x.reshape(N, D).astype(io_dtype)
    wt = w.T.astype(io_dtype)                                  # kernel: x @ wt == x @ W^T
    params = jnp.stack([b, gamma, beta]).astype(jnp.float32)   # (3, D): one small DMA

    itemsize = jnp.dtype(io_dtype).itemsize
    Dp = _round_up(D, 128)                                     # padded lane footprint

    def run(w_buffers):
        # Generation-aware VMEM budget (v7x has only 64 MiB per TensorCore).
        try:
            vmem_cap = int(pltpu.get_tpu_info().vmem_capacity_bytes)
        except Exception:
            vmem_cap = 64 << 20                                # conservative fallback
        budget = min(vmem_cap, 128 << 20) - (8 << 20)          # leave headroom

        w_bytes = w_buffers * itemsize * _round_up(D, 8) * Dp  # resident W^T
        params_bytes = 2 * 4 * 8 * Dp                          # (3,D) f32, padded
        tile_row_bytes = 2 * (itemsize + itemsize) * Dp        # 2x-buffered x + out

        tm_budget = (budget - w_bytes - params_bytes) // tile_row_bytes
        tm_budget = (tm_budget // 128) * 128
        if tm_budget < 8:
            # TODO(synk): for D so large that the resident W^T blows the VMEM
            # budget (e.g. D >= ~4096 bf16 on v7x), add a K grid axis marked
            # "arbitrary" with a (tm, D) f32 accumulator scratch and (tk, D)
            # W^T blocks instead of keeping W fully resident.
            raise ValueError(f"dim_model={D} too large for resident-weight kernel")

        # Row tile: as large as the request/budget allow, never bigger than N.
        tm_eff = max(8, min(tm, tm_budget, _round_up(N, 8)))

        vmem_needed = w_bytes + params_bytes + tm_eff * tile_row_bytes
        vmem_limit = int(min(max(vmem_needed + (4 << 20), 32 << 20), budget))

        # Partial edge block (no pad / slice): garbage rows are inert because
        # LayerNorm is strictly per-row, and their stores are masked.
        grid = (pl.cdiv(N, tm_eff),)

        if w_buffers == 1:
            # Grid-invariant blocks: nothing to prefetch -> single buffer.
            w_spec = pl.BlockSpec((D, D), lambda i: (0, 0),
                                  pipeline_mode=pl.Buffered(1))
            p_spec = pl.BlockSpec((3, D), lambda i: (0, 0),
                                  pipeline_mode=pl.Buffered(1))
        else:
            w_spec = pl.BlockSpec((D, D), lambda i: (0, 0))
            p_spec = pl.BlockSpec((3, D), lambda i: (0, 0))

        return pl.pallas_call(
            skip_connection_kernel,
            out_shape=jax.ShapeDtypeStruct((N, D), io_dtype),
            grid_spec=pltpu.PrefetchScalarGridSpec(
                num_scalar_prefetch=0,
                grid=grid,
                in_specs=[
                    pl.BlockSpec((tm_eff, D), lambda i: (i, 0)),   # x row tile
                    w_spec,                                        # W^T (resident)
                    p_spec,                                        # [bias; gamma; beta]
                ],
                out_specs=pl.BlockSpec((tm_eff, D), lambda i: (i, 0)),
            ),
            compiler_params=pltpu.CompilerParams(
                dimension_semantics=("parallel",),   # rows shard across TCs (v7x)
                vmem_limit_bytes=vmem_limit,
            ),
        )(x2, wt, params)

    try:
        out2 = run(w_buffers=1)          # single-buffered grid-invariant weight
    except Exception:
        out2 = run(w_buffers=2)          # fallback if Buffered(1) is unsupported

    return out2.reshape(B, S, D)


def reference(x, w, b, gamma, beta):
    """Pure-JAX reference mirroring the PyTorch module (dropout p=0 -> identity)."""
    y = jnp.einsum("bsd,ed->bse", x, w) + b
    y = jnp.where(y > 0, y, NEG_SLOPE * y)
    h = x + y
    mu = jnp.mean(h, axis=-1, keepdims=True)
    var = jnp.mean((h - mu) ** 2, axis=-1, keepdims=True)
    return (h - mu) * jax.lax.rsqrt(var + LN_EPS) * gamma + beta


if __name__ == "__main__":
    # Small but lane-dense demo: D = 128 keeps stores unmasked and the MXU fed.
    batch, seq, dim_model = 2, 8, 128

    key = jax.random.PRNGKey(0)
    kx, kw, kb, kg, kbe = jax.random.split(key, 5)

    x = jax.random.normal(kx, (batch, seq, dim_model), dtype=jnp.float32)
    # Deterministic "synthetic" parameters (shapes per nn.Linear / nn.LayerNorm).
    bound = 1.0 / (dim_model ** 0.5)
    w = jax.random.uniform(kw, (dim_model, dim_model), minval=-bound, maxval=bound,
                           dtype=jnp.float32)
    b = jax.random.uniform(kb, (dim_model,), minval=-bound, maxval=bound,
                           dtype=jnp.float32)
    gamma = jnp.ones((dim_model,), jnp.float32) + 0.01 * jax.random.normal(
        kg, (dim_model,), dtype=jnp.float32)
    beta = 0.01 * jax.random.normal(kbe, (dim_model,), dtype=jnp.float32)

    ref = reference(x, w, b, gamma, beta)

    # Default path: bf16 transport (halved HBM traffic), loose tolerance.
    out = skip_connection(x, w, b, gamma, beta)
    out = jax.block_until_ready(out)
    assert out.shape == (batch, seq, dim_model)
    assert jnp.allclose(out.astype(jnp.float32), ref, atol=0.1, rtol=0.05), \
        "bf16-transport mismatch vs reference"

    # f32 transport: exact-semantics check.
    out_f32 = skip_connection(x, w, b, gamma, beta, io_dtype=jnp.float32)
    out_f32 = jax.block_until_ready(out_f32)
    assert out_f32.shape == (batch, seq, dim_model)
    assert jnp.allclose(out_f32, ref, atol=5e-5, rtol=1e-5), \
        "f32 mismatch vs reference"

    print("KERNEL_OK")
</pallas_src>

<mosaic_0001>
module attributes {stable_mosaic.version = 11 : i64} {
  func.func @skip_connection_kernel(%arg0: i32, %arg1: memref<16x128xbf16, #tpu.memory_space<vmem>>, %arg2: memref<128x128xbf16, #tpu.memory_space<vmem>>, %arg3: memref<3x128xf32, #tpu.memory_space<vmem>>, %arg4: memref<16x128xbf16, #tpu.memory_space<vmem>>) attributes {dimension_semantics = [#tpu.dimension_semantics<parallel>], iteration_bounds = array<i64: 1>, scalar_prefetch = 0 : i64, scratch_operands = 0 : i64, tpu.core_type = #tpu.core_type<tc>, window_params = [{transform_indices = @transform_0, window_bounds = array<i64: 16, 128>}, {pipeline_mode = #tpu.pipeline_mode<synchronous>, transform_indices = @transform_1, window_bounds = array<i64: 128, 128>}, {pipeline_mode = #tpu.pipeline_mode<synchronous>, transform_indices = @transform_2, window_bounds = array<i64: 3, 128>}, {transform_indices = @transform_3, window_bounds = array<i64: 16, 128>}]} {
    %c0 = arith.constant 0 : index
    %c0_0 = arith.constant 0 : index
    %0 = vector.load %arg1[%c0, %c0_0] : memref<16x128xbf16, #tpu.memory_space<vmem>>, vector<16x128xbf16>
    %c0_1 = arith.constant 0 : index
    %c0_2 = arith.constant 0 : index
    %1 = vector.load %arg2[%c0_1, %c0_2] : memref<128x128xbf16, #tpu.memory_space<vmem>>, vector<128x128xbf16>
    %cst = arith.constant dense<0.000000e+00> : vector<16x128xf32>
    %2 = tpu.matmul %0, %1, %cst {dimension_numbers = #tpu.dot_dimension_numbers<[1], [0], [0], [1], [0, 0, 1, 1], [], []>} : vector<16x128xbf16>, vector<128x128xbf16>, vector<16x128xf32> -> vector<16x128xf32>
    %c0_3 = arith.constant 0 : index
    %c0_4 = arith.constant 0 : index
    %3 = vector.load %arg3[%c0_3, %c0_4] : memref<3x128xf32, #tpu.memory_space<vmem>>, vector<1x128xf32>
    %c1 = arith.constant 1 : index
    %c0_5 = arith.constant 0 : index
    %4 = vector.load %arg3[%c1, %c0_5] : memref<3x128xf32, #tpu.memory_space<vmem>>, vector<1x128xf32>
    %c2 = arith.constant 2 : index
    %c0_6 = arith.constant 0 : index
    %5 = vector.load %arg3[%c2, %c0_6] : memref<3x128xf32, #tpu.memory_space<vmem>>, vector<1x128xf32>
    %6 = vector.broadcast %3 : vector<1x128xf32> to vector<16x128xf32>
    %7 = arith.addf %2, %6 : vector<16x128xf32>
    %cst_7 = arith.constant 0.000000e+00 : f32
    %8 = vector.broadcast %cst_7 : f32 to vector<16x128xf32>
    %9 = arith.cmpf ogt, %7, %8 : vector<16x128xf32>
    %cst_8 = arith.constant 0.00999999977 : f32
    %10 = vector.broadcast %cst_8 : f32 to vector<16x128xf32>
    %11 = arith.mulf %10, %7 : vector<16x128xf32>
    %12 = arith.select %9, %7, %11 : vector<16x128xi1>, vector<16x128xf32>
    %13 = arith.extf %0 : vector<16x128xbf16> to vector<16x128xf32>
    %14 = arith.addf %13, %12 : vector<16x128xf32>
    %cst_9 = arith.constant dense<0.000000e+00> : vector<16xf32>
    %15 = vector.multi_reduction <add>, %14, %cst_9 [1] : vector<16x128xf32> to vector<16xf32>
    %16 = vector.shape_cast %15 : vector<16xf32> to vector<16x1xf32>
    %cst_10 = arith.constant 1.280000e+02 : f32
    %17 = vector.broadcast %cst_10 : f32 to vector<16x1xf32>
    %18 = arith.divf %16, %17 : vector<16x1xf32>
    %19 = vector.broadcast %18 : vector<16x1xf32> to vector<16x128xf32>
    %20 = arith.subf %14, %19 : vector<16x128xf32>
    %21 = arith.mulf %20, %20 : vector<16x128xf32>
    %cst_11 = arith.constant dense<0.000000e+00> : vector<16xf32>
    %22 = vector.multi_reduction <add>, %21, %cst_11 [1] : vector<16x128xf32> to vector<16xf32>
    %23 = vector.shape_cast %22 : vector<16xf32> to vector<16x1xf32>
    %cst_12 = arith.constant 1.280000e+02 : f32
    %24 = vector.broadcast %cst_12 : f32 to vector<16x1xf32>
    %25 = arith.divf %23, %24 : vector<16x1xf32>
    %cst_13 = arith.constant 9.99999974E-6 : f32
    %26 = vector.broadcast %cst_13 : f32 to vector<16x1xf32>
    %27 = arith.addf %25, %26 : vector<16x1xf32>
    %28 = math.rsqrt %27 : vector<16x1xf32>
    %29 = vector.broadcast %28 : vector<16x1xf32> to vector<16x128xf32>
    %30 = arith.mulf %20, %29 : vector<16x128xf32>
    %31 = vector.broadcast %4 : vector<1x128xf32> to vector<16x128xf32>
    %32 = arith.mulf %30, %31 : vector<16x128xf32>
    %33 = vector.broadcast %5 : vector<1x128xf32> to vector<16x128xf32>
    %34 = arith.addf %32, %33 : vector<16x128xf32>
    %35 = arith.truncf %34 : vector<16x128xf32> to vector<16x128xbf16>
    %c0_14 = arith.constant 0 : index
    %c0_15 = arith.constant 0 : index
    %36 = vector.load %arg4[%c0_14, %c0_15] : memref<16x128xbf16, #tpu.memory_space<vmem>>, vector<16x128xbf16>
    tpu.vector_store %arg4[%c0_14, %c0_15], %35 {strides = array<i32>} : memref<16x128xbf16, #tpu.memory_space<vmem>>, vector<16x128xbf16>,
    return
  }
  func.func @transform_0(%arg0: i32) -> (i32, i32) {
    %c0_i32 = arith.constant 0 : i32
    %c0_i32_0 = arith.constant 0 : i32
    return %arg0, %c0_i32 : i32, i32
  }
  func.func @transform_1(%arg0: i32) -> (i32, i32) {
    %c0_i32 = arith.constant 0 : i32
    %c0_i32_0 = arith.constant 0 : i32
    %c0_i32_1 = arith.constant 0 : i32
    return %c0_i32, %c0_i32_0 : i32, i32
  }
  func.func @transform_2(%arg0: i32) -> (i32, i32) {
    %c0_i32 = arith.constant 0 : i32
    %c0_i32_0 = arith.constant 0 : i32
    %c0_i32_1 = arith.constant 0 : i32
    return %c0_i32, %c0_i32_0 : i32, i32
  }
  func.func @transform_3(%arg0: i32) -> (i32, i32) {
    %c0_i32 = arith.constant 0 : i32
    %c0_i32_0 = arith.constant 0 : i32
    return %arg0, %c0_i32 : i32, i32
  }
}

module attributes {stable_mosaic.version = 11 : i64} {
  func.func @skip_connection_kernel(%arg0: i32, %arg1: memref<16x128xbf16, #tpu.memory_space<vmem>>, %arg2: memref<128x128xbf16, #tpu.memory_space<vmem>>, %arg3: memref<3x128xf32, #tpu.memory_space<vmem>>, %arg4: memref<16x128xbf16, #tpu.memory_space<vmem>>) attributes {dimension_semantics = [#tpu.dimension_semantics<parallel>], iteration_bounds = array<i64: 1>, scalar_prefetch = 0 : i64, scratch_operands = 0 : i64, tpu.core_type = #tpu.core_type<tc>, window_params = [{transform_indices = @transform_0, window_bounds = array<i64: 16, 128>}, {pipeline_mode = #tpu.pipeline_mode<synchronous>, transform_indices = @transform_1, window_bounds = array<i64: 128, 128>}, {pipeline_mode = #tpu.pipeline_mode<synchronous>, transform_indices = @transform_2, window_bounds = array<i64: 3, 128>}, {transform_indices = @transform_3, window_bounds = array<i64: 16, 128>}]} {
    %c0 = arith.constant 0 : index
    %c0_0 = arith.constant 0 : index
    %0 = vector.load %arg1[%c0, %c0_0] : memref<16x128xbf16, #tpu.memory_space<vmem>>, vector<16x128xbf16>
    %c0_1 = arith.constant 0 : index
    %c0_2 = arith.constant 0 : index
    %1 = vector.load %arg2[%c0_1, %c0_2] : memref<128x128xbf16, #tpu.memory_space<vmem>>, vector<128x128xbf16>
    %cst = arith.constant dense<0.000000e+00> : vector<16x128xf32>
    %2 = tpu.matmul %0, %1, %cst {dimension_numbers = #tpu.dot_dimension_numbers<[1], [0], [0], [1], [0, 0, 1, 1], [], []>} : vector<16x128xbf16>, vector<128x128xbf16>, vector<16x128xf32> -> vector<16x128xf32>
    %c0_3 = arith.constant 0 : index
    %c0_4 = arith.constant 0 : index
    %3 = vector.load %arg3[%c0_3, %c0_4] : memref<3x128xf32, #tpu.memory_space<vmem>>, vector<1x128xf32>
    %c1 = arith.constant 1 : index
    %c0_5 = arith.constant 0 : index
    %4 = vector.load %arg3[%c1, %c0_5] : memref<3x128xf32, #tpu.memory_space<vmem>>, vector<1x128xf32>
    %c2 = arith.constant 2 : index
    %c0_6 = arith.constant 0 : index
    %5 = vector.load %arg3[%c2, %c0_6] : memref<3x128xf32, #tpu.memory_space<vmem>>, vector<1x128xf32>
    %6 = vector.broadcast %3 : vector<1x128xf32> to vector<16x128xf32>
    %7 = arith.addf %2, %6 : vector<16x128xf32>
    %cst_7 = arith.constant 0.000000e+00 : f32
    %8 = vector.broadcast %cst_7 : f32 to vector<16x128xf32>
    %9 = arith.cmpf ogt, %7, %8 : vector<16x128xf32>
    %cst_8 = arith.constant 0.00999999977 : f32
    %10 = vector.broadcast %cst_8 : f32 to vector<16x128xf32>
    %11 = arith.mulf %10, %7 : vector<16x128xf32>
    %12 = arith.select %9, %7, %11 : vector<16x128xi1>, vector<16x128xf32>
    %13 = arith.extf %0 : vector<16x128xbf16> to vector<16x128xf32>
    %14 = arith.addf %13, %12 : vector<16x128xf32>
    %cst_9 = arith.constant dense<0.000000e+00> : vector<16xf32>
    %15 = vector.multi_reduction <add>, %14, %cst_9 [1] : vector<16x128xf32> to vector<16xf32>
    %16 = vector.shape_cast %15 : vector<16xf32> to vector<16x1xf32>
    %cst_10 = arith.constant 1.280000e+02 : f32
    %17 = vector.broadcast %cst_10 : f32 to vector<16x1xf32>
    %18 = arith.divf %16, %17 : vector<16x1xf32>
    %19 = vector.broadcast %18 : vector<16x1xf32> to vector<16x128xf32>
    %20 = arith.subf %14, %19 : vector<16x128xf32>
    %21 = arith.mulf %20, %20 : vector<16x128xf32>
    %cst_11 = arith.constant dense<0.000000e+00> : vector<16xf32>
    %22 = vector.multi_reduction <add>, %21, %cst_11 [1] : vector<16x128xf32> to vector<16xf32>
    %23 = vector.shape_cast %22 : vector<16xf32> to vector<16x1xf32>
    %cst_12 = arith.constant 1.280000e+02 : f32
    %24 = vector.broadcast %cst_12 : f32 to vector<16x1xf32>
    %25 = arith.divf %23, %24 : vector<16x1xf32>
    %cst_13 = arith.constant 9.99999974E-6 : f32
    %26 = vector.broadcast %cst_13 : f32 to vector<16x1xf32>
    %27 = arith.addf %25, %26 : vector<16x1xf32>
    %28 = math.rsqrt %27 : vector<16x1xf32>
    %29 = vector.broadcast %28 : vector<16x1xf32> to vector<16x128xf32>
    %30 = arith.mulf %20, %29 : vector<16x128xf32>
    %31 = vector.broadcast %4 : vector<1x128xf32> to vector<16x128xf32>
    %32 = arith.mulf %30, %31 : vector<16x128xf32>
    %33 = vector.broadcast %5 : vector<1x128xf32> to vector<16x128xf32>
    %34 = arith.addf %32, %33 : vector<16x128xf32>
    %35 = arith.truncf %34 : vector<16x128xf32> to vector<16x128xbf16>
    %c0_14 = arith.constant 0 : index
    %c0_15 = arith.constant 0 : index
    %36 = vector.load %arg4[%c0_14, %c0_15] : memref<16x128xbf16, #tpu.memory_space<vmem>>, vector<16x128xbf16>
    tpu.vector_store %arg4[%c0_14, %c0_15], %35 {strides = array<i32>} : memref<16x128xbf16, #tpu.memory_space<vmem>>, vector<16x128xbf16>,
    return
  }
  func.func @transform_0(%arg0: i32) -> (i32, i32) {
    %c0_i32 = arith.constant 0 : i32
    %c0_i32_0 = arith.constant 0 : i32
    return %arg0, %c0_i32 : i32, i32
  }
  func.func @transform_1(%arg0: i32) -> (i32, i32) {
    %c0_i32 = arith.constant 0 : i32
    %c0_i32_0 = arith.constant 0 : i32
    %c0_i32_1 = arith.constant 0 : i32
    return %c0_i32, %c0_i32_0 : i32, i32
  }
  func.func @transform_2(%arg0: i32) -> (i32, i32) {
    %c0_i32 = arith.constant 0 : i32
    %c0_i32_0 = arith.constant 0 : i32
    %c0_i32_1 = arith.constant 0 : i32
    return %c0_i32, %c0_i32_0 : i32, i32
  }
  func.func @transform_3(%arg0: i32) -> (i32, i32) {
    %c0_i32 = arith.constant 0 : i32
    %c0_i32_0 = arith.constant 0 : i32
    return %arg0, %c0_i32 : i32, i32
  }
}

</mosaic_0001>

<bundles_post_ra>
// kernel: tpu_custom_call.1
= control target key start
LH: loop header
LB: loop body
LE: loop exit
PB: predicated region body
PF: predicated region fallthrough
CT: control target
= control target key end

     0   :  { %8 = vsyncpa [#allocation3], 0  ;;  %s461_s0 = inlined_call_operand.hbm [shape: bf16[16,128], index: 0, kind: input, shape index: {}]   ;;  %s462_s1 = inlined_call_operand.hbm [shape: bf16[128,128], index: 1, kind: input, shape index: {}]   ;;  %s463_s2 = inlined_call_operand.vmem [shape: f32[3,128], index: 2, kind: input, shape index: {}]   ;;  %s464_s3 = inlined_call_operand.hbm [shape: bf16[16,128], index: 3, kind: output, shape index: {}]  }
   0x1   :  { %9 = vsyncpa [#allocation6], 0 }
   0x2   :  { %10 = vsyncpa [#allocation4], 0  ;;  %s380_s12 = smov [#allocation2]   ;;  %s308_s16 = scalar_lea.hbm %s461_s0, 128 }
   0x3   :  { %s16_s13 = sshll.u32 %s380_s12, 4  ;;  %p309_p0 = scmp.ne.s32.totalorder %s461_s0, %s308_s16  ;;  %s17_s13 = int_to_ptr.vmem [resolvable:$true] %s16_s13 }
   0x4   :  { %p312_p1 = scmp.lt.u32.totalorder %s308_s16, %s461_s0 }
   0x6   :  { %p314_p2 = pnand %p312_p1, %p309_p0 }
   0x8   :  { %317 = shalt.err (!%p314_p2)
}
   0x9   :  { %s318_s21 = scalar_lea.vmem %s17_s13, 128  ;;  %p323_p4 = scmp.lt.s32.totalorder %s17_s13, %s17_s13 }
   0xa   :  { %p319_p3 = scmp.ne.s32.totalorder %s17_s13, %s318_s21  ;;  %p324_p5 = scmp.lt.s32.totalorder %s318_s21, %s318_s21 }
   0xc   :  { %p325_p6 = por %p324_p5, %p323_p4 }
   0xe   :  { %p326_p7 = pnand %p325_p6, %p319_p3 }
  0x10   :  { %329 = shalt.err (!%p326_p7)
}
  0x11   :  { %s381_s22 = smov 64   ;;  %s382_s23 = smov 4  }
  0x12   :  { %22 = dma.hbm_to_vmem [thread:$0]  %s461_s0, 128, %s17_s13, [#allocation3], %s381_s22, %s381_s22, %s382_s23  }
  0x13   :  { %s383_s26 = smov [#allocation5]   ;;  %s330_s30 = scalar_lea.hbm %s462_s1, 1024 }
  0x14   :  { %s28_s27 = sshll.u32 %s383_s26, 4  ;;  %p331_p8 = scmp.ne.s32.totalorder %s462_s1, %s330_s30  ;;  %s29_s27 = int_to_ptr.vmem [resolvable:$true] %s28_s27 }
  0x15   :  { %p334_p9 = scmp.lt.u32.totalorder %s330_s30, %s462_s1 }
  0x17   :  { %p336_p10 = pnand %p334_p9, %p331_p8 }
  0x19   :  { %339 = shalt.err (!%p336_p10)
}
  0x1a   :  { %s340_s8 = scalar_lea.vmem %s29_s27, 1024  ;;  %p345_p12 = scmp.lt.s32.totalorder %s29_s27, %s29_s27 }
  0x1b   :  { %p341_p11 = scmp.ne.s32.totalorder %s29_s27, %s340_s8  ;;  %p346_p13 = scmp.lt.s32.totalorder %s340_s8, %s340_s8 }
  0x1d   :  { %p347_p0 = por %p346_p13, %p345_p12 }
  0x1f   :  { %p348_p1 = pnand %p347_p0, %p341_p11 }
  0x21   :  { %351 = shalt.err (!%p348_p1)
}
  0x22   :  { %34 = dma.hbm_to_vmem [thread:$0]  %s462_s1, 1024, %s29_s27, [#allocation6], %s381_s22, %s381_s22, %s382_s23  }
  0x23   :  { %374 = dma.done.wait [#allocation3], 128  }
  0x24   :  { %375 = vsyncadd [#allocation3], 4294967168 }
  0x25   :  { %376 = dma.done.wait [#allocation6], 1024  }
  0x26   :  { %377 = vsyncadd [#allocation6], 4294966272  ;;  %v384_v0 = vmov 0.0   ;;  %vm385_vm0 = vmmov 0   ;;  %v294_v1 = vld [vmem:[#allocation5] sm:$0xff]   ;;  %v295_v2 = vld [vmem:[#allocation5 + $0x8] sm:$0xff]  }
  0x27   :  { %267 = vmatprep.subr.bf16.mxu0 %v384_v0  ;;  %283 = vmatprep.mubr.msk.bf16.mxu0 %vm385_vm0, %v384_v0  ;;  %v296_v3 = vld [vmem:[#allocation5 + $0x10] sm:$0xff]   ;;  %v297_v4 = vld [vmem:[#allocation5 + $0x18] sm:$0xff]   ;;  %v298_v5 = vld [vmem:[#allocation5 + $0x20] sm:$0xff]   ;;  %s386_s15 = smov [#allocation7]  }
  0x28   :  { %268 = vmatpush3.bf16.msra.mxu0 %v294_v1  ;;  %v299_v6 = vld [vmem:[#allocation5 + $0x28] sm:$0xff]   ;;  %v300_v7 = vld [vmem:[#allocation5 + $0x30] sm:$0xff]   ;;  %v301_v8 = vld [vmem:[#allocation5 + $0x38] sm:$0xff]   ;;  %s224_s16 = sshll.u32 %s386_s15, 4  ;;  %s225_s16 = int_to_ptr.vmem [resolvable:$true] %s224_s16 }
  0x29   :  { %269 = vmatprep.subr.bf16.mxu0 %v384_v0  ;;  %v44_v9 = vld [vmem:[#allocation2] sm:$0xff]   ;;  %s352_s17 = scalar_lea.vmem %s225_s16, 128  ;;  %p357_p3 = scmp.lt.s32.totalorder %s225_s16, %s225_s16 }
  0x2a   :  { %v237_v10 = vld [vmem:[%s463_s2] ss:$0 sm:$0xff]  ;;  %v170_v15 = vunpack.c.l.bf16 %v44_v9  ;;  %v171_v22 = vunpack.c.h.bf16 %v44_v9  ;;  %v247_v41 = vld [vmem:[%s463_s2 + $0x1] ss:$0 sm:$0xff]  ;;  %v248_v45 = vld [vmem:[%s463_s2 + $0x2] ss:$0 sm:$0xff]  ;;  %p353_p2 = scmp.ne.s32.totalorder %s225_s16, %s352_s17  ;;  %p358_p4 = scmp.lt.s32.totalorder %s352_s17, %s352_s17 }
  0x2c   :  { %270 = vmatpush3.bf16.msra.mxu0 %v295_v2  ;;  %p359_p5 = por %p358_p4, %p357_p3 }
  0x2d   :  { %271 = vmatprep.subr.bf16.mxu0 %v384_v0 }
  0x2e   :  { %p360_p6 = pnand %p359_p5, %p353_p2 }
  0x30   :  { %272 = vmatpush3.bf16.msra.mxu0 %v296_v3 }
  0x31   :  { %273 = vmatprep.subr.bf16.mxu0 %v384_v0 }
  0x34   :  { %274 = vmatpush3.bf16.msra.mxu0 %v297_v4 }
  0x35   :  { %275 = vmatprep.subr.bf16.mxu0 %v384_v0 }
  0x38   :  { %276 = vmatpush3.bf16.msra.mxu0 %v298_v5 }
  0x39   :  { %277 = vmatprep.subr.bf16.mxu0 %v384_v0 }
  0x3c   :  { %278 = vmatpush3.bf16.msra.mxu0 %v299_v6 }
  0x3d   :  { %279 = vmatprep.subr.bf16.mxu0 %v384_v0 }
  0x40   :  { %280 = vmatpush3.bf16.msra.mxu0 %v300_v7 }
  0x41   :  { %281 = vmatprep.subr.bf16.mxu0 %v384_v0 }
  0x44   :  { %282 = vmatpush3.bf16.msra.mxu0 %v301_v8 }
  0x47   :  { %284 = vmatmul.mubr.bf16.vlgmr.msra.gmra.mrb[0].mxu0 %v44_v9 }
 0x11a   :  { %v157_v11 = vpop.f32.mrb[0].mxu0 }
 0x11b   :  { %v158_v12 = vadd.f32 %v237_v10, %v157_v11  ;;  %v285_v13 = vpop.f32.mrb[1].mxu0 }
 0x11c   :  { %v160_v14 = vpop.f32.mrb[2].mxu0 }
 0x11d   :  { %v166_v16 = vmul.f32 0.01, %v158_v12  ;;  %v161_v17 = vadd.f32 %v237_v10, %v160_v14  ;;  %v286_v18 = vpop.f32.mrb[3].mxu0  ;;  %vm164_vm1 = vcmp.gt.f32.partialorder %v158_v12, 0.0 }
 0x11f   :  { %v167_v19 = vmul.f32 0.01, %v161_v17  ;;  %v168_v20 = vsel %vm164_vm1, %v158_v12, %v166_v16  ;;  %vm165_vm2 = vcmp.gt.f32.partialorder %v161_v17, 0.0 }
 0x120   :  { %v172_v21 = vadd.f32 %v170_v15, %v168_v20 }
 0x121   :  { %v169_v23 = vsel %vm165_vm2, %v161_v17, %v167_v19 }
 0x122   :  { %174 = vadd.xlane.f32.xlu0 %v172_v21  ;;  %v173_v24 = vadd.f32 %v171_v22, %v169_v23 }
 0x126   :  { %176 = vadd.xlane.f32.xlu0 %v173_v24 }
 0x1af   :  { %v175_v25 = vpop.xlane.xlu0 %174 }
 0x1b0   :  { %v179_v26 = vmul.f32 0.0078125, %v175_v25 }
 0x1b2   :  { %v181_v27 = vsub.f32 %v172_v21, %v179_v26 }
 0x1b3   :  { %v177_v28 = vpop.xlane.xlu0 %176 }
 0x1b4   :  { %v180_v29 = vmul.f32 0.0078125, %v177_v28  ;;  %v183_v30 = vmul.f32 %v181_v27, %v181_v27 }
 0x1b6   :  { %v182_v31 = vsub.f32 %v173_v24, %v180_v29  ;;  %185 = vadd.xlane.f32.xlu1 %v183_v30 }
 0x1b8   :  { %v184_v32 = vmul.f32 %v182_v31, %v182_v31 }
 0x1ba   :  { %187 = vadd.xlane.f32.xlu1 %v184_v32 }
 0x243   :  { %v186_v33 = vpop.xlane.xlu1 %185 }
 0x244   :  { %v189_v34 = vmul.f32 0.0078125, %v186_v33 }
 0x246   :  { %v191_v35 = vadd.f32 1e-05, %v189_v34 }
 0x247   :  { %v188_v36 = vpop.xlane.xlu1 %187 }
 0x248   :  { %304 = vrsqrt.f32 %v191_v35  ;;  %v190_v37 = vmul.f32 0.0078125, %v188_v36 }
 0x24a   :  { %v192_v38 = vadd.f32 1e-05, %v190_v37 }
 0x24c   :  { %306 = vrsqrt.f32 %v192_v38 }
 0x252   :  { %v305_v39 = vpop.eup %304 }
 0x253   :  { %v195_v40 = vmul.f32 %v305_v39, %v181_v27 }
 0x255   :  { %v201_v44 = vmul.f32 %v247_v41, %v195_v40 }
 0x256   :  { %v307_v42 = vpop.eup %306 }
 0x257   :  { %v196_v43 = vmul.f32 %v307_v42, %v182_v31  ;;  %v207_v47 = vadd.f32 %v248_v45, %v201_v44 }
 0x259   :  { %v202_v46 = vmul.f32 %v247_v41, %v196_v43 }
 0x25b   :  { %v208_v48 = vadd.f32 %v248_v45, %v202_v46 }
 0x25d   :  { %v256_v49 = vpack.c.bf16 %v208_v48, %v207_v47 }
 0x25f   :  { %257 = vst [vmem:[#allocation7] sm:$0xff] %v256_v49  }
 0x260   :  { %363 = shalt.err (!%p360_p6)
}
 0x261   :  { %s364_s20 = scalar_lea.hbm %s464_s3, 128 }
 0x262   :  { %p365_p7 = scmp.ne.s32.totalorder %s464_s3, %s364_s20  ;;  %p368_p8 = scmp.lt.u32.totalorder %s364_s20, %s464_s3 }
 0x264   :  { %p370_p9 = pnand %p368_p8, %p365_p7 }
 0x266   :  { %373 = shalt.err (!%p370_p9)
}
 0x267   :  { %230 = dma.vmem_to_hbm [thread:$0]  %s225_s16, 128, %s464_s3, [#allocation4], %s381_s22, %s381_s22, %s382_s23  }
 0x268   :  { %378 = dma.done.wait [#allocation4], 128  }
 0x269   :  { %379 = vsyncadd [#allocation4], 4294967168 }
 0x26a   :  { %234 = vsyncpa [#allocation3], 1 }
 0x26b   :  { %235 = vsyncpa [#allocation6], 1 }
 0x26c   :  { %236 = vsyncpa [#allocation4], 1 }

// kernel: tpu_custom_call.1
= control target key start
LH: loop header
LB: loop body
LE: loop exit
PB: predicated region body
PF: predicated region fallthrough
CT: control target
= control target key end

     0   :  { %8 = vsyncpa [#allocation3], 0  ;;  %s461_s0 = inlined_call_operand.hbm [shape: bf16[16,128], index: 0, kind: input, shape index: {}]   ;;  %s462_s1 = inlined_call_operand.hbm [shape: bf16[128,128], index: 1, kind: input, shape index: {}]   ;;  %s463_s2 = inlined_call_operand.vmem [shape: f32[3,128], index: 2, kind: input, shape index: {}]   ;;  %s464_s3 = inlined_call_operand.hbm [shape: bf16[16,128], index: 3, kind: output, shape index: {}]  }
   0x1   :  { %9 = vsyncpa [#allocation6], 0 }
   0x2   :  { %10 = vsyncpa [#allocation4], 0  ;;  %s380_s12 = smov [#allocation2]   ;;  %s308_s16 = scalar_lea.hbm %s461_s0, 128 }
   0x3   :  { %s16_s13 = sshll.u32 %s380_s12, 4  ;;  %p309_p0 = scmp.ne.s32.totalorder %s461_s0, %s308_s16  ;;  %s17_s13 = int_to_ptr.vmem [resolvable:$true] %s16_s13 }
   0x4   :  { %p312_p1 = scmp.lt.u32.totalorder %s308_s16, %s461_s0 }
   0x6   :  { %p314_p2 = pnand %p312_p1, %p309_p0 }
   0x8   :  { %317 = shalt.err (!%p314_p2)
}
   0x9   :  { %s318_s21 = scalar_lea.vmem %s17_s13, 128  ;;  %p323_p4 = scmp.lt.s32.totalorder %s17_s13, %s17_s13 }
   0xa   :  { %p319_p3 = scmp.ne.s32.totalorder %s17_s13, %s318_s21  ;;  %p324_p5 = scmp.lt.s32.totalorder %s318_s21, %s318_s21 }
   0xc   :  { %p325_p6 = por %p324_p5, %p323_p4 }
   0xe   :  { %p326_p7 = pnand %p325_p6, %p319_p3 }
  0x10   :  { %329 = shalt.err (!%p326_p7)
}
  0x11   :  { %s381_s22 = smov 64   ;;  %s382_s23 = smov 4  }
  0x12   :  { %22 = dma.hbm_to_vmem [thread:$0]  %s461_s0, 128, %s17_s13, [#allocation3], %s381_s22, %s381_s22, %s382_s23  }
  0x13   :  { %s383_s26 = smov [#allocation5]   ;;  %s330_s30 = scalar_lea.hbm %s462_s1, 1024 }
  0x14   :  { %s28_s27 = sshll.u32 %s383_s26, 4  ;;  %p331_p8 = scmp.ne.s32.totalorder %s462_s1, %s330_s30  ;;  %s29_s27 = int_to_ptr.vmem [resolvable:$true] %s28_s27 }
  0x15   :  { %p334_p9 = scmp.lt.u32.totalorder %s330_s30, %s462_s1 }
  0x17   :  { %p336_p10 = pnand %p334_p9, %p331_p8 }
  0x19   :  { %339 = shalt.err (!%p336_p10)
}
  0x1a   :  { %s340_s8 = scalar_lea.vmem %s29_s27, 1024  ;;  %p345_p12 = scmp.lt.s32.totalorder %s29_s27, %s29_s27 }
  0x1b   :  { %p341_p11 = scmp.ne.s32.totalorder %s29_s27, %s340_s8  ;;  %p346_p13 = scmp.lt.s32.totalorder %s340_s8, %s340_s8 }
  0x1d   :  { %p347_p0 = por %p346_p13, %p345_p12 }
  0x1f   :  { %p348_p1 = pnand %p347_p0, %p341_p11 }
  0x21   :  { %351 = shalt.err (!%p348_p1)
}
  0x22   :  { %34 = dma.hbm_to_vmem [thread:$0]  %s462_s1, 1024, %s29_s27, [#allocation6], %s381_s22, %s381_s22, %s382_s23  }
  0x23   :  { %374 = dma.done.wait [#allocation3], 128  }
  0x24   :  { %375 = vsyncadd [#allocation3], 4294967168 }
  0x25   :  { %376 = dma.done.wait [#allocation6], 1024  }
  0x26   :  { %377 = vsyncadd [#allocation6], 4294966272  ;;  %v384_v0 = vmov 0.0   ;;  %vm385_vm0 = vmmov 0   ;;  %v294_v1 = vld [vmem:[#allocation5] sm:$0xff]   ;;  %v295_v2 = vld [vmem:[#allocation5 + $0x8] sm:$0xff]  }
  0x27   :  { %267 = vmatprep.subr.bf16.mxu0 %v384_v0  ;;  %283 = vmatprep.mubr.msk.bf16.mxu0 %vm385_vm0, %v384_v0  ;;  %v296_v3 = vld [vmem:[#allocation5 + $0x10] sm:$0xff]   ;;  %v297_v4 = vld [vmem:[#allocation5 + $0x18] sm:$0xff]   ;;  %v298_v5 = vld [vmem:[#allocation5 + $0x20] sm:$0xff]   ;;  %s386_s15 = smov [#allocation7]  }
  0x28   :  { %268 = vmatpush3.bf16.msra.mxu0 %v294_v1  ;;  %v299_v6 = vld [vmem:[#allocation5 + $0x28] sm:$0xff]   ;;  %v300_v7 = vld [vmem:[#allocation5 + $0x30] sm:$0xff]   ;;  %v301_v8 = vld [vmem:[#allocation5 + $0x38] sm:$0xff]   ;;  %s224_s16 = sshll.u32 %s386_s15, 4  ;;  %s225_s16 = int_to_ptr.vmem [resolvable:$true] %s224_s16 }
  0x29   :  { %269 = vmatprep.subr.bf16.mxu0 %v384_v0  ;;  %v44_v9 = vld [vmem:[#allocation2] sm:$0xff]   ;;  %s352_s17 = scalar_lea.vmem %s225_s16, 128  ;;  %p357_p3 = scmp.lt.s32.totalorder %s225_s16, %s225_s16 }
  0x2a   :  { %v237_v10 = vld [vmem:[%s463_s2] ss:$0 sm:$0xff]  ;;  %v170_v15 = vunpack.c.l.bf16 %v44_v9  ;;  %v171_v22 = vunpack.c.h.bf16 %v44_v9  ;;  %v247_v41 = vld [vmem:[%s463_s2 + $0x1] ss:$0 sm:$0xff]  ;;  %v248_v45 = vld [vmem:[%s463_s2 + $0x2] ss:$0 sm:$0xff]  ;;  %p353_p2 = scmp.ne.s32.totalorder %s225_s16, %s352_s17  ;;  %p358_p4 = scmp.lt.s32.totalorder %s352_s17, %s352_s17 }
  0x2c   :  { %270 = vmatpush3.bf16.msra.mxu0 %v295_v2  ;;  %p359_p5 = por %p358_p4, %p357_p3 }
  0x2d   :  { %271 = vmatprep.subr.bf16.mxu0 %v384_v0 }
  0x2e   :  { %p360_p6 = pnand %p359_p5, %p353_p2 }
  0x30   :  { %272 = vmatpush3.bf16.msra.mxu0 %v296_v3 }
  0x31   :  { %273 = vmatprep.subr.bf16.mxu0 %v384_v0 }
  0x34   :  { %274 = vmatpush3.bf16.msra.mxu0 %v297_v4 }
  0x35   :  { %275 = vmatprep.subr.bf16.mxu0 %v384_v0 }
  0x38   :  { %276 = vmatpush3.bf16.msra.mxu0 %v298_v5 }
  0x39   :  { %277 = vmatprep.subr.bf16.mxu0 %v384_v0 }
  0x3c   :  { %278 = vmatpush3.bf16.msra.mxu0 %v299_v6 }
  0x3d   :  { %279 = vmatprep.subr.bf16.mxu0 %v384_v0 }
  0x40   :  { %280 = vmatpush3.bf16.msra.mxu0 %v300_v7 }
  0x41   :  { %281 = vmatprep.subr.bf16.mxu0 %v384_v0 }
  0x44   :  { %282 = vmatpush3.bf16.msra.mxu0 %v301_v8 }
  0x47   :  { %284 = vmatmul.mubr.bf16.vlgmr.msra.gmra.mrb[0].mxu0 %v44_v9 }
 0x11a   :  { %v157_v11 = vpop.f32.mrb[0].mxu0 }
 0x11b   :  { %v158_v12 = vadd.f32 %v237_v10, %v157_v11  ;;  %v285_v13 = vpop.f32.mrb[1].mxu0 }
 0x11c   :  { %v160_v14 = vpop.f32.mrb[2].mxu0 }
 0x11d   :  { %v166_v16 = vmul.f32 0.01, %v158_v12  ;;  %v161_v17 = vadd.f32 %v237_v10, %v160_v14  ;;  %v286_v18 = vpop.f32.mrb[3].mxu0  ;;  %vm164_vm1 = vcmp.gt.f32.partialorder %v158_v12, 0.0 }
 0x11f   :  { %v167_v19 = vmul.f32 0.01, %v161_v17  ;;  %v168_v20 = vsel %vm164_vm1, %v158_v12, %v166_v16  ;;  %vm165_vm2 = vcmp.gt.f32.partialorder %v161_v17, 0.0 }
 0x120   :  { %v172_v21 = vadd.f32 %v170_v15, %v168_v20 }
 0x121   :  { %v169_v23 = vsel %vm165_vm2, %v161_v17, %v167_v19 }
 0x122   :  { %174 = vadd.xlane.f32.xlu0 %v172_v21  ;;  %v173_v24 = vadd.f32 %v171_v22, %v169_v23 }
 0x126   :  { %176 = vadd.xlane.f32.xlu0 %v173_v24 }
 0x1af   :  { %v175_v25 = vpop.xlane.xlu0 %174 }
 0x1b0   :  { %v179_v26 = vmul.f32 0.0078125, %v175_v25 }
 0x1b2   :  { %v181_v27 = vsub.f32 %v172_v21, %v179_v26 }
 0x1b3   :  { %v177_v28 = vpop.xlane.xlu0 %176 }
 0x1b4   :  { %v180_v29 = vmul.f32 0.0078125, %v177_v28  ;;  %v183_v30 = vmul.f32 %v181_v27, %v181_v27 }
 0x1b6   :  { %v182_v31 = vsub.f32 %v173_v24, %v180_v29  ;;  %185 = vadd.xlane.f32.xlu1 %v183_v30 }
 0x1b8   :  { %v184_v32 = vmul.f32 %v182_v31, %v182_v31 }
 0x1ba   :  { %187 = vadd.xlane.f32.xlu1 %v184_v32 }
 0x243   :  { %v186_v33 = vpop.xlane.xlu1 %185 }
 0x244   :  { %v189_v34 = vmul.f32 0.0078125, %v186_v33 }
 0x246   :  { %v191_v35 = vadd.f32 1e-05, %v189_v34 }
 0x247   :  { %v188_v36 = vpop.xlane.xlu1 %187 }
 0x248   :  { %304 = vrsqrt.f32 %v191_v35  ;;  %v190_v37 = vmul.f32 0.0078125, %v188_v36 }
 0x24a   :  { %v192_v38 = vadd.f32 1e-05, %v190_v37 }
 0x24c   :  { %306 = vrsqrt.f32 %v192_v38 }
 0x252   :  { %v305_v39 = vpop.eup %304 }
 0x253   :  { %v195_v40 = vmul.f32 %v305_v39, %v181_v27 }
 0x255   :  { %v201_v44 = vmul.f32 %v247_v41, %v195_v40 }
 0x256   :  { %v307_v42 = vpop.eup %306 }
 0x257   :  { %v196_v43 = vmul.f32 %v307_v42, %v182_v31  ;;  %v207_v47 = vadd.f32 %v248_v45, %v201_v44 }
 0x259   :  { %v202_v46 = vmul.f32 %v247_v41, %v196_v43 }
 0x25b   :  { %v208_v48 = vadd.f32 %v248_v45, %v202_v46 }
 0x25d   :  { %v256_v49 = vpack.c.bf16 %v208_v48, %v207_v47 }
 0x25f   :  { %257 = vst [vmem:[#allocation7] sm:$0xff] %v256_v49  }
 0x260   :  { %363 = shalt.err (!%p360_p6)
}
 0x261   :  { %s364_s20 = scalar_lea.hbm %s464_s3, 128 }
 0x262   :  { %p365_p7 = scmp.ne.s32.totalorder %s464_s3, %s364_s20  ;;  %p368_p8 = scmp.lt.u32.totalorder %s364_s20, %s464_s3 }
 0x264   :  { %p370_p9 = pnand %p368_p8, %p365_p7 }
 0x266   :  { %373 = shalt.err (!%p370_p9)
}
 0x267   :  { %230 = dma.vmem_to_hbm [thread:$0]  %s225_s16, 128, %s464_s3, [#allocation4], %s381_s22, %s381_s22, %s382_s23  }
 0x268   :  { %378 = dma.done.wait [#allocation4], 128  }
 0x269   :  { %379 = vsyncadd [#allocation4], 4294967168 }
 0x26a   :  { %234 = vsyncpa [#allocation3], 1 }
 0x26b   :  { %235 = vsyncpa [#allocation6], 1 }
 0x26c   :  { %236 = vsyncpa [#allocation4], 1 }

</bundles_post_ra>
